<compile_context>
chip_gen: v7x
topology: tpu7x:2x2x1
jax: 0.10.0
libtpu: 0.0.40
codegen_flags: <defaults>
</compile_context>

<pallas_src>
import math
import re

import numpy as np
import jax
import jax.numpy as jnp
from jax.experimental import pallas as pl
from jax.experimental.pallas import tpu as pltpu

_CompilerParams = getattr(pltpu, "CompilerParams", None)
if _CompilerParams is None:          # older JAX releases
    _CompilerParams = getattr(pltpu, "TPUCompilerParams")


def _round_up(x, m):
    return (x + m - 1) // m * m


def _tpu_info():
    try:
        return pltpu.get_tpu_info()
    except Exception:
        return None


def _vmem_capacity_bytes():
    info = _tpu_info()
    cap = getattr(info, "vmem_capacity_bytes", None) if info is not None else None
    if cap:
        return int(cap)
    return 64 << 20          # conservative default: v7x physical VMEM / core


def _prefer_fp8_splat():
    """Use fp8 (e4m3) splat storage only on a positively-detected v7x chip
    (halves the dominant HBM stream there); bf16 everywhere else."""
    if not hasattr(jnp, "float8_e4m3fn"):
        return False
    info = _tpu_info()
    if info is None:
        return False
    txt = " ".join(str(getattr(info, a, ""))
                   for a in ("chip_version", "version", "name", "chip"))
    return re.search(r"(?i)(tpu[_ ]?v?7|v7x)", txt) is not None


def _pick_tiles(K, N, M, vmem_cap, splat_bytes):
    """Lane-dense tiles sized per generation: bigger on v5e/v6e (128 MiB VMEM)
    than on v7x (64 MiB); fp8 S storage allows a bigger tm on small VMEM.
    Small problems get small tiles so the pipeline still has >1 step."""
    big_vmem = vmem_cap >= (100 << 20)        # v5e / v6e
    if big_vmem:
        tm, tn = 1024, 512
    else:
        tm, tn = (1024 if splat_bytes == 1 else 512), 256
    tm = min(tm, _round_up(M, 128))
    tn = min(tn, _round_up(N, 128))
    if M <= 2048:
        tm = min(tm, 256)
    if N <= 1024:
        tn = min(tn, 128)
    # keep the double-buffered S tile bounded even for large K
    budget = 16 << 20
    while 2 * K * tn * tm * splat_bytes > budget and tm > 128:
        tm = max(128, _round_up(tm // 2, 128))
    while 2 * K * tn * tm * splat_bytes > budget and tn > 128:
        tn = max(128, _round_up(tn // 2, 128))
    # TODO(synk): band-align tn/tm to W/ow for spatially coherent sample maps
    # (cuts average active n-tiles per m-tile and therefore the dominant DMA).
    return tn, tm


def _mapped_tconv_kernel(gm_ref, nt_ref, first_ref, act_ref,   # scalar prefetch (SMEM, 1-D)
                         lhs_ref, s_ref, b_ref,                # VMEM inputs
                         o_ref):                               # VMEM output (resident accumulator)
    step = pl.program_id(0)

    @pl.when(first_ref[step] == 1)
    def _init():
        # bias goes to every output pixel; the output block is the accumulator
        o_ref[...] = jnp.broadcast_to(b_ref[...], o_ref.shape)

    @pl.when(act_ref[step] == 1)
    def _accumulate():
        s = s_ref[...]
        if s.dtype != jnp.bfloat16:        # fp8 storage -> bf16 MXU operand
            s = s.astype(jnp.bfloat16)
        # single MXU matmul per step, reduction depth K*tn, f32 accumulation
        o_ref[...] += jnp.dot(lhs_ref[...], s,
                              preferred_element_type=jnp.float32)


def build_splat_matrix(sample_map, oh, ow, interp):
    """Dense scatter matrix S[k, n, m]: weight of input pixel n, tap k onto
    output pixel m.  Out-of-bounds targets are dropped."""
    H, W, K, _ = sample_map.shape
    N, M = H * W, oh * ow
    sm = sample_map.reshape(N, K, 2).astype(jnp.float32)
    xs, ys = sm[..., 0], sm[..., 1]
    k_idx = jnp.broadcast_to(jnp.arange(K)[None, :], (N, K))
    n_idx = jnp.broadcast_to(jnp.arange(N)[:, None], (N, K))
    S = jnp.zeros((K, N, M), jnp.float32)

    if interp == 0:
        # nearest: floor(x + 0.5) (matches the CUDA op, not round-half-to-even)
        xi = jnp.floor(xs + 0.5).astype(jnp.int32)
        yi = jnp.floor(ys + 0.5).astype(jnp.int32)
        valid = (xi >= 0) & (xi < ow) & (yi >= 0) & (yi < oh)
        idx = jnp.where(valid, yi * ow + xi, 0)
        S = S.at[k_idx, n_idx, idx].add(valid.astype(jnp.float32))
    elif interp == 1:
        # bilinear splatting over the 4 surrounding output pixels
        x0 = jnp.floor(xs)
        y0 = jnp.floor(ys)
        dx, dy = xs - x0, ys - y0
        x0i = x0.astype(jnp.int32)
        y0i = y0.astype(jnp.int32)
        for xi, yi, wgt in ((x0i,     y0i,     (1.0 - dx) * (1.0 - dy)),
                            (x0i + 1, y0i,     dx * (1.0 - dy)),
                            (x0i,     y0i + 1, (1.0 - dx) * dy),
                            (x0i + 1, y0i + 1, dx * dy)):
            valid = (xi >= 0) & (xi < ow) & (yi >= 0) & (yi < oh)
            idx = jnp.where(valid, yi * ow + xi, 0)
            S = S.at[k_idx, n_idx, idx].add(jnp.where(valid, wgt, 0.0))
    else:
        # TODO(synk): bispherical splatting not implemented
        raise NotImplementedError("bispherical interpolation is not implemented")
    return S


class MappedTransposedConvolution:
    def __init__(self, in_channels, out_channels, kernel_size=1,
                 interpolation='bilinear', bias=True, key=None,
                 splat_dtype=None):
        self.in_channels = in_channels
        self.out_channels = out_channels
        self.kernel_size = kernel_size
        if interpolation == 'nearest':
            self.interp = 0
        elif interpolation == 'bilinear':
            self.interp = 1
        elif interpolation == 'bispherical':
            self.interp = 2
        else:
            assert False, 'Unsupported interpolation type'

        if splat_dtype is None:
            splat_dtype = (jnp.float8_e4m3fn if _prefer_fp8_splat()
                           else jnp.bfloat16)
        self._splat_dtype = splat_dtype

        # deterministic init, same distribution as reset_parameters()
        n = in_channels * kernel_size
        stdv = 1.0 / math.sqrt(n)
        key = jax.random.PRNGKey(0) if key is None else key
        kw, kb = jax.random.split(key)
        self.weight = jax.random.uniform(
            kw, (in_channels, out_channels, kernel_size), jnp.float32, -stdv, stdv)
        if bias:
            self.bias = jax.random.uniform(
                kb, (out_channels,), jnp.float32, -stdv, stdv)
        else:
            self.bias = jnp.zeros((out_channels,), jnp.float32)

        self._splat_cache = None      # (sample_map, (oh, ow, interp), payload)

    # ---- glue: splat matrix, tiling plan and flattened step list (cached) ---
    def _prepare_splat(self, sample_map, oh, ow):
        c = self._splat_cache
        # NOTE: keyed on object identity — passing an equal-but-new sample_map
        # rebuilds the plan (correct, but a performance footgun).
        if (c is not None and c[0] is sample_map
                and c[1] == (oh, ow, self.interp)):
            return c[2]

        H, W, K, _ = sample_map.shape
        N, M = H * W, oh * ow

        if K * N * M * 4 > (2 << 30):
            # TODO(synk): build the splat matrix per m-tile chunk (or scatter
            # in-kernel) instead of materialising the dense (K, N, M) matrix.
            raise NotImplementedError(
                "sample map too large for dense splat-matrix build")

        vmem_cap = _vmem_capacity_bytes()
        splat_dtype = self._splat_dtype
        splat_bytes = jnp.dtype(splat_dtype).itemsize
        tn, tm = _pick_tiles(K, N, M, vmem_cap, splat_bytes)
        N_pad, M_pad = _round_up(N, tn), _round_up(M, tm)
        GN, GM = N_pad // tn, M_pad // tm

        S = build_splat_matrix(sample_map, oh, ow, self.interp)            # (K,N,M) f32
        S = jnp.pad(S, ((0, 0), (0, N_pad - N), (0, M_pad - M)))
        # regroup rows by n-tile so one (K*tn, tm) block holds every tap of one
        # n-tile, rows ordered (n-tile, k, n_local) to match the LHS columns
        S_r = (S.reshape(K, GN, tn, M_pad)
               .transpose(1, 0, 2, 3)
               .reshape(GN * K * tn, M_pad)
               .astype(splat_dtype))

        # tile-level sparsity -> flattened step plan (no dead max_cnt padding)
        # TODO(synk): balance the step list across the two v7x TensorCores.
        tile_mask = np.asarray(
            (S != 0).reshape(K, GN, tn, GM, tm).any(axis=(0, 2, 4)))       # (GN, GM)
        gm_steps, nt_steps, first_steps, act_steps = [], [], [], []
        prev_nt = 0
        for g in range(GM):
            idx = np.nonzero(tile_mask[:, g])[0]
            if idx.size == 0:
                # output tile receives no splat: one step just writes the bias
                gm_steps.append(g); nt_steps.append(prev_nt)
                first_steps.append(1); act_steps.append(0)
            else:
                for j, nt in enumerate(idx):
                    gm_steps.append(g); nt_steps.append(int(nt))
                    first_steps.append(1 if j == 0 else 0)
                    act_steps.append(1)
                    prev_nt = int(nt)

        payload = dict(
            S_r=S_r,
            gm_steps=jnp.asarray(gm_steps, jnp.int32),
            nt_steps=jnp.asarray(nt_steps, jnp.int32),
            first_steps=jnp.asarray(first_steps, jnp.int32),
            act_steps=jnp.asarray(act_steps, jnp.int32),
            n_steps=len(gm_steps),
            tn=tn, tm=tm, N_pad=N_pad, M_pad=M_pad, GN=GN, GM=GM,
            vmem_cap=vmem_cap, splat_dtype=splat_dtype)
        self._splat_cache = (sample_map, (oh, ow, self.interp), payload)
        return payload

    def __call__(self, x, oh, ow, sample_map, interp_weights=None):
        if interp_weights is not None:
            # TODO(synk): weighted mapped transposed conv not implemented
            raise NotImplementedError("interp_weights is not supported")
        if self.interp == 2:
            # TODO(synk): bispherical splatting not implemented
            raise NotImplementedError("bispherical interpolation is not implemented")

        B, C_in, H, W = x.shape
        assert C_in == self.in_channels
        assert sample_map.shape == (H, W, self.kernel_size, 2)
        K, C_out = self.kernel_size, self.out_channels
        N, M = H * W, oh * ow

        sp = self._prepare_splat(sample_map, oh, ow)
        tn, tm = sp["tn"], sp["tm"]
        N_pad, M_pad, GN = sp["N_pad"], sp["M_pad"], sp["GN"]
        n_steps = sp["n_steps"]
        splat_dtype = sp["splat_dtype"]

        # ---- channel contraction done ONCE in XLA (removes the in-kernel
        # per-tap matmuls, the bf16 staging scratch and the B^2 block-diagonal
        # weight).  Single bf16 rounding of contrib.
        contrib = jnp.einsum('bin,iok->bokn',
                             x.reshape(B, C_in, N).astype(jnp.float32),
                             self.weight)                        # (B,C_out,K,N) f32
        contrib = contrib.reshape(B * C_out, K, N)
        if N_pad > N:
            contrib = jnp.pad(contrib, ((0, 0), (0, 0), (0, N_pad - N)))
        # columns ordered (n-tile, tap, n_local) to match S_r's row order
        lhs = (contrib.reshape(B * C_out, K, GN, tn)
               .transpose(0, 2, 1, 3)
               .reshape(B * C_out, GN * K * tn)
               .astype(jnp.bfloat16))

        bias2d = jnp.tile(self.bias, (B,)).reshape(B * C_out, 1).astype(jnp.float32)

        # ---- explicit VMEM budget (double-buffered S/lhs/out tiles + margin) --
        s_bytes = K * tn * tm * jnp.dtype(splat_dtype).itemsize
        lhs_bytes = B * C_out * K * tn * 2
        out_bytes = B * C_out * tm * 4
        bias_bytes = _round_up(B * C_out, 8) * 128 * 4
        need = 2 * (s_bytes + lhs_bytes + out_bytes) + bias_bytes + (4 << 20)
        vmem_limit = int(min(max(need, 32 << 20), int(sp["vmem_cap"] * 0.7)))

        grid_spec = pltpu.PrefetchScalarGridSpec(
            num_scalar_prefetch=4,          # gm / n-tile / first / active per step
            grid=(n_steps,),                # only the ACTIVE (m-tile, n-tile) pairs
            in_specs=[
                pl.BlockSpec((B * C_out, K * tn),
                             lambda s, gm, nt, fr, ac: (0, nt[s])),
                pl.BlockSpec((K * tn, tm),
                             lambda s, gm, nt, fr, ac: (nt[s], gm[s])),
                # invariant operand: whole-array VMEM, no double buffering
                pl.BlockSpec(memory_space=pltpu.MemorySpace.VMEM),
            ],
            out_specs=pl.BlockSpec((B * C_out, tm),
                                   lambda s, gm, nt, fr, ac: (0, gm[s])),
        )

        out = pl.pallas_call(
            _mapped_tconv_kernel,
            out_shape=jax.ShapeDtypeStruct((B * C_out, M_pad), jnp.float32),
            grid_spec=grid_spec,
            compiler_params=_CompilerParams(
                dimension_semantics=("arbitrary",),
                vmem_limit_bytes=vmem_limit),
        )(sp["gm_steps"], sp["nt_steps"], sp["first_steps"], sp["act_steps"],
          lhs, sp["S_r"], bias2d)

        return out[:, :M].reshape(B, C_out, oh, ow)


def _reference(x, weight, bias, sample_map, oh, ow, interp,
               splat_dtype=jnp.bfloat16):
    """Pure-JAX reference with the same quantisation as the kernel."""
    B, C_in, H, W = x.shape
    C_out = weight.shape[1]
    N = H * W
    S = build_splat_matrix(sample_map, oh, ow, interp)
    Sq = S.astype(splat_dtype).astype(jnp.float32)
    contrib = jnp.einsum('bin,iok->bokn',
                         x.reshape(B, C_in, N).astype(jnp.float32), weight)
    contrib = contrib.astype(jnp.bfloat16).astype(jnp.float32)
    out = jnp.einsum('bokn,knm->bom', contrib, Sq) + bias[None, :, None]
    return out.reshape(B, C_out, oh, ow)


if __name__ == "__main__":
    # small shapes (but big enough to exercise multiple M and N tiles)
    B, C_in, C_out = 2, 4, 8
    H, W = 24, 24
    K = 4
    OH, OW = 48, 48

    key = jax.random.PRNGKey(0)
    kx, kmx, kmy, kmod = jax.random.split(key, 4)

    x = jax.random.normal(kx, (B, C_in, H, W), jnp.float32)
    # sample_map: input_height x input_width x kernel_size x 2 with (x, y)
    # pointing into the output image (a few taps fall out of bounds on purpose)
    sm_x = jax.random.uniform(kmx, (H, W, K, 1), jnp.float32, -1.0, OW - 0.5)
    sm_y = jax.random.uniform(kmy, (H, W, K, 1), jnp.float32, -1.0, OH - 0.5)
    sample_map = jnp.concatenate([sm_x, sm_y], axis=-1)

    conv = MappedTransposedConvolution(C_in, C_out, kernel_size=K,
                                       interpolation='bilinear', bias=True,
                                       key=kmod)

    out = jax.block_until_ready(conv(x, OH, OW, sample_map))
    # second call exercises the cached splat matrix / tiling / step plan
    out2 = jax.block_until_ready(conv(x, OH, OW, sample_map))

    ref = _reference(x, conv.weight, conv.bias, sample_map, OH, OW,
                     conv.interp, conv._splat_dtype)
    assert out.shape == (B, C_out, OH, OW)
    max_err = float(jnp.max(jnp.abs(out - ref)))
    assert jnp.allclose(out, ref, rtol=2e-2, atol=2e-2), max_err
    assert jnp.allclose(out, out2), "cached-splat path mismatch"

    print("KERNEL_OK")
</pallas_src>

<mosaic_0001>
module attributes {stable_mosaic.version = 11 : i64} {
  func.func @_mapped_tconv_kernel(%arg0: i32, %arg1: memref<25xi32, #tpu.memory_space<smem>>, %arg2: memref<25xi32, #tpu.memory_space<smem>>, %arg3: memref<25xi32, #tpu.memory_space<smem>>, %arg4: memref<25xi32, #tpu.memory_space<smem>>, %arg5: memref<16x512xbf16, #tpu.memory_space<vmem>>, %arg6: memref<512x512xbf16, #tpu.memory_space<vmem>>, %arg7: memref<16x1xf32, #tpu.memory_space<vmem>>, %arg8: memref<16x512xf32, #tpu.memory_space<vmem>>) attributes {dimension_semantics = [#tpu.dimension_semantics<arbitrary>], iteration_bounds = array<i64: 25>, scalar_prefetch = 4 : i64, scratch_operands = 0 : i64, tpu.core_type = #tpu.core_type<tc>, window_params = [{transform_indices = @transform_0, window_bounds = array<i64: 16, 512>}, {transform_indices = @transform_1, window_bounds = array<i64: 512, 512>}, {pipeline_mode = #tpu.pipeline_mode<synchronous>, transform_indices = @transform_2, window_bounds = array<i64: 16, 1>}, {transform_indices = @transform_3, window_bounds = array<i64: 16, 512>}]} {
    %0 = arith.index_cast %arg0 : i32 to index
    %1 = memref.load %arg3[%0] : memref<25xi32, #tpu.memory_space<smem>>
    %c1_i32 = arith.constant 1 : i32
    %2 = arith.cmpi eq, %1, %c1_i32 : i32
    %3 = arith.extui %2 : i1 to i32
    %c0_i32 = arith.constant 0 : i32
    %4 = arith.cmpi ne, %3, %c0_i32 : i32
    scf.if %4 {
      %c0 = arith.constant 0 : index
      %c0_2 = arith.constant 0 : index
      %10 = vector.load %arg7[%c0, %c0_2] : memref<16x1xf32, #tpu.memory_space<vmem>>, vector<16x1xf32>
      %11 = vector.shape_cast %10 : vector<16x1xf32> to vector<16x1xf32>
      %12 = vector.broadcast %11 : vector<16x1xf32> to vector<16x512xf32>
      %c0_3 = arith.constant 0 : index
      %c0_4 = arith.constant 0 : index
      %13 = vector.load %arg8[%c0_3, %c0_4] : memref<16x512xf32, #tpu.memory_space<vmem>>, vector<16x512xf32>
      tpu.vector_store %arg8[%c0_3, %c0_4], %12 {strides = array<i32>} : memref<16x512xf32, #tpu.memory_space<vmem>>, vector<16x512xf32>,
    } else {
    }
    %5 = arith.index_cast %arg0 : i32 to index
    %6 = memref.load %arg4[%5] : memref<25xi32, #tpu.memory_space<smem>>
    %c1_i32_0 = arith.constant 1 : i32
    %7 = arith.cmpi eq, %6, %c1_i32_0 : i32
    %8 = arith.extui %7 : i1 to i32
    %c0_i32_1 = arith.constant 0 : i32
    %9 = arith.cmpi ne, %8, %c0_i32_1 : i32
    scf.if %9 {
      %c0 = arith.constant 0 : index
      %c0_2 = arith.constant 0 : index
      %10 = vector.load %arg6[%c0, %c0_2] : memref<512x512xbf16, #tpu.memory_space<vmem>>, vector<512x512xbf16>
      %c0_3 = arith.constant 0 : index
      %c0_4 = arith.constant 0 : index
      %11 = vector.load %arg8[%c0_3, %c0_4] : memref<16x512xf32, #tpu.memory_space<vmem>>, vector<16x512xf32>
      %c0_5 = arith.constant 0 : index
      %c0_6 = arith.constant 0 : index
      %12 = vector.load %arg5[%c0_5, %c0_6] : memref<16x512xbf16, #tpu.memory_space<vmem>>, vector<16x512xbf16>
      %cst = arith.constant dense<0.000000e+00> : vector<16x512xf32>
      %13 = tpu.matmul %12, %10, %cst {dimension_numbers = #tpu.dot_dimension_numbers<[1], [0], [0], [1], [0, 0, 1, 1], [], []>} : vector<16x512xbf16>, vector<512x512xbf16>, vector<16x512xf32> -> vector<16x512xf32>
      %14 = arith.addf %11, %13 : vector<16x512xf32>
      %c0_7 = arith.constant 0 : index
      %c0_8 = arith.constant 0 : index
      %15 = vector.load %arg8[%c0_7, %c0_8] : memref<16x512xf32, #tpu.memory_space<vmem>>, vector<16x512xf32>
      tpu.vector_store %arg8[%c0_7, %c0_8], %14 {strides = array<i32>} : memref<16x512xf32, #tpu.memory_space<vmem>>, vector<16x512xf32>,
    } else {
    }
    return
  }
  func.func @transform_0(%arg0: i32, %arg1: memref<25xi32, #tpu.memory_space<smem>>, %arg2: memref<25xi32, #tpu.memory_space<smem>>, %arg3: memref<25xi32, #tpu.memory_space<smem>>, %arg4: memref<25xi32, #tpu.memory_space<smem>>) -> (i32, i32) {
    %0 = arith.index_cast %arg0 : i32 to index
    %1 = memref.load %arg2[%0] : memref<25xi32, #tpu.memory_space<smem>>
    %c0_i32 = arith.constant 0 : i32
    %c0_i32_0 = arith.constant 0 : i32
    return %c0_i32, %1 : i32, i32
  }
  func.func @transform_1(%arg0: i32, %arg1: memref<25xi32, #tpu.memory_space<smem>>, %arg2: memref<25xi32, #tpu.memory_space<smem>>, %arg3: memref<25xi32, #tpu.memory_space<smem>>, %arg4: memref<25xi32, #tpu.memory_space<smem>>) -> (i32, i32) {
    %0 = arith.index_cast %arg0 : i32 to index
    %1 = memref.load %arg2[%0] : memref<25xi32, #tpu.memory_space<smem>>
    %2 = arith.index_cast %arg0 : i32 to index
    %3 = memref.load %arg1[%2] : memref<25xi32, #tpu.memory_space<smem>>
    %c0_i32 = arith.constant 0 : i32
    return %1, %3 : i32, i32
  }
  func.func @transform_2(%arg0: i32, %arg1: memref<25xi32, #tpu.memory_space<smem>>, %arg2: memref<25xi32, #tpu.memory_space<smem>>, %arg3: memref<25xi32, #tpu.memory_space<smem>>, %arg4: memref<25xi32, #tpu.memory_space<smem>>) -> (i32, i32) {
    %c0_i32 = arith.constant 0 : i32
    %c0_i32_0 = arith.constant 0 : i32
    %c0_i32_1 = arith.constant 0 : i32
    return %c0_i32, %c0_i32_0 : i32, i32
  }
  func.func @transform_3(%arg0: i32, %arg1: memref<25xi32, #tpu.memory_space<smem>>, %arg2: memref<25xi32, #tpu.memory_space<smem>>, %arg3: memref<25xi32, #tpu.memory_space<smem>>, %arg4: memref<25xi32, #tpu.memory_space<smem>>) -> (i32, i32) {
    %0 = arith.index_cast %arg0 : i32 to index
    %1 = memref.load %arg1[%0] : memref<25xi32, #tpu.memory_space<smem>>
    %c0_i32 = arith.constant 0 : i32
    %c0_i32_0 = arith.constant 0 : i32
    return %c0_i32, %1 : i32, i32
  }
}

</mosaic_0001>

<bundles_post_ra>
// kernel: tpu_custom_call.1
= control target key start
LH: loop header
LB: loop body
LE: loop exit
PB: predicated region body
PF: predicated region fallthrough
CT: control target
= control target key end

     0   :  { %s2714_s0 = inlined_call_operand.hbm [shape: s32[25], index: 0, kind: input, shape index: {}]   ;;  %s2715_s4 = inlined_call_operand.hbm [shape: bf16[16,2560], index: 4, kind: input, shape index: {}]   ;;  %s2716_s5 = inlined_call_operand.hbm [shape: bf16[2560,2560], index: 5, kind: input, shape index: {}]   ;;  %s2717_s6 = inlined_call_operand.vmem [shape: f32[16,1], index: 6, kind: input, shape index: {}]   ;;  %s2718_s7 = inlined_call_operand.hbm [shape: f32[16,2560], index: 7, kind: output, shape index: {}]   ;;  %s2719_s1 = inlined_call_operand.hbm [shape: s32[25], index: 1, kind: input, shape index: {}]   ;;  %s2720_s2 = inlined_call_operand.hbm [shape: s32[25], index: 2, kind: input, shape index: {}]   ;;  %s2721_s3 = inlined_call_operand.hbm [shape: s32[25], index: 3, kind: input, shape index: {}]  }
   0x1   :  { %2737 = sst [smem:[#allocation32_spill]] %s2715_s4  ;;  %s1887_s26 = scalar_lea.hbm %s2714_s0, 16 }
   0x2   :  { %p1888_p0 = scmp.ne.s32.totalorder %s2714_s0, %s1887_s26  ;;  %p1891_p1 = scmp.lt.u32.totalorder %s1887_s26, %s2714_s0 }
   0x4   :  { %p1893_p2 = pnand %p1891_p1, %p1888_p0 }
   0x6   :  { %1896 = shalt.err (!%p1893_p2)  }
   0x7   :  { %s2109_s8 = smov [#allocation3]   ;;  %s1897_s13 = scalar_lea.hbm %s2719_s1, 16 }
   0x8   :  { %13 = dma.hbm_to_smem %s2714_s0, 16, %s2109_s8, [#allocation2] }
   0x9   :  { %p1898_p3 = scmp.ne.s32.totalorder %s2719_s1, %s1897_s13  ;;  %p1901_p4 = scmp.lt.u32.totalorder %s1897_s13, %s2719_s1 }
   0xb   :  { %p1903_p5 = pnand %p1901_p4, %p1898_p3 }
   0xd   :  { %1906 = shalt.err (!%p1903_p5)  }
   0xe   :  { %s2110_s18 = smov [#allocation4]   ;;  %s1907_s22 = scalar_lea.hbm %s2720_s2, 16 }
   0xf   :  { %15 = dma.hbm_to_smem %s2719_s1, 16, %s2110_s18, [#allocation2] }
  0x10   :  { %p1908_p6 = scmp.ne.s32.totalorder %s2720_s2, %s1907_s22  ;;  %p1911_p7 = scmp.lt.u32.totalorder %s1907_s22, %s2720_s2 }
  0x12   :  { %p1913_p8 = pnand %p1911_p7, %p1908_p6 }
  0x14   :  { %1916 = shalt.err (!%p1913_p8)  }
  0x15   :  { %s2111_s27 = smov [#allocation5]   ;;  %s1917_s8 = scalar_lea.hbm %s2721_s3, 16 }
  0x16   :  { %17 = dma.hbm_to_smem %s2720_s2, 16, %s2111_s27, [#allocation2] }
  0x17   :  { %p1918_p9 = scmp.ne.s32.totalorder %s2721_s3, %s1917_s8  ;;  %p1921_p10 = scmp.lt.u32.totalorder %s1917_s8, %s2721_s3 }
  0x19   :  { %p1923_p11 = pnand %p1921_p10, %p1918_p9 }
  0x1b   :  { %1926 = shalt.err (!%p1923_p11)  }
  0x1c   :  { %s2112_s13 = smov [#allocation6]  }
  0x1d   :  { %19 = dma.hbm_to_smem %s2721_s3, 16, %s2112_s13, [#allocation2] }
  0x1e   :  { %2055 = dma.done.wait [#allocation2], 64 }
  0x1f   :  { %2056 = vsyncadd [#allocation2], 4294967232 }
  0x20   :  { %21 = sfence }
  0x21   :  { %22 = vsyncpa [#allocation8], 0 }
  0x22   :  { %24 = vsyncpa [#allocation8 + $0x1], 0 }
  0x23   :  { %25 = vsyncpa [#allocation11], 0 }
  0x24   :  { %27 = vsyncpa [#allocation11 + $0x1], 0 }
  0x25   :  { %28 = vsyncpa [#allocation9], 0 }
  0x26   :  { %30 = vsyncpa [#allocation9 + $0x1], 0  ;;  %s2211_s2 = smov 0   ;;  %s2213_s16 = smov 0  }
  0x27   :  { %s2215_s17 = smov 0   ;;  %s2217_s18 = smov 0  }
  0x28   :  { %s2219_s19 = smov 0   ;;  %s2221_s3 = smov 0  }
  0x29   :  { %s2223_s20 = smov 0   ;;  %s2225_s0 = smov 0  }
  0x2a   :  { %s2227_s21 = smov 0   ;;  %s2229_s22 = smov 0  }
  0x2b LB: > { %2738 = sst [smem:[#allocation24_spill]] %s2079_s17  ;;  %s2260_s23 = sadd.s32 4294967295, %s2107_s22   ;;  %s2107_s22 = sphi %s2229_s22, %s2770_s22   ;;  %s2103_s21 = sphi %s2227_s21, %s2776_s21   ;;  %s2099_s0 = sphi %s2225_s0, %s2782_s0   ;;  %s2095_s20 = sphi %s2223_s20, %s2781_s20   ;;  %s2091_s3 = sphi %s2221_s3, %s2774_s3   ;;  %s2087_s19 = sphi %s2219_s19, %s2780_s19   ;;  %s2083_s18 = sphi %s2217_s18, %s2779_s18   ;;  %s2079_s17 = sphi %s2215_s17, %s2772_s17   ;;  %s2075_s16 = sphi %s2213_s16, %s2778_s16   ;;  %s2071_s2 = sphi %s2211_s2, %s2777_s2  }
  0x2c   : > { %2739 = sst [smem:[#allocation25_spill]] %s2091_s3  ;;  %s1399_s24 = sadd.s32 4294967294, %s2107_s22  }
  0x2d   : > { %2740 = sst [smem:[#allocation26_spill]] %s2103_s21  ;;  %s2264_s25 = sadd.s32 1, %s2107_s22  }
  0x2e   : > { %2741 = sst [smem:[#allocation27_spill]] %s2264_s25  ;;  %s45_s28 = sadd.s32 1, %s2103_s21 }
  0x2f   : > { %s40_s26 = sld [smem:[#allocation4 + %s2107_s22]]  ;;  %p52_p12 = scmp.ne.s32.totalorder %s2103_s21, %s2099_s0 }
  0x30   : > { %s41_s27 = sld [smem:[#allocation4 + %s2264_s25]]  ;;  %p2724_p13 = scmp.eq.s32.totalorder %s2107_s22, 0 }
  0x31   : > { %p58_p0 = scmp.ne.s32.totalorder %s2099_s0, %s2095_s20  ;;  %p2725_p1 = scmp.eq.s32.totalorder %s2260_s23, 0 }
  0x32   : > { %p2276_p2 = por %p2724_p13, %p52_p12  ;;  %s121_s1 = sld [smem:[#allocation3 + %s2107_s22]] }
  0x33   : > { %p2283_p3 = por %p2725_p1, %p58_p0  ;;  %s122_s8 = sld [smem:[#allocation3 + %s2264_s25]] }
  0x34   : > { %s126_s9 = sadd.s32 1, %s2079_s17  ;;  %p136_p4 = scmp.ne.s32.totalorder %s2079_s17, %s2075_s16 }
  0x35   : > { %s2743_s30 = scalar_select %p2283_p3, 1, 0 }
  0x36   : > { %s42_s10 = ssub.s32 %s40_s26, %s41_s27  ;;  %p137_p5 = scmp.eq.s32.totalorder %s2260_s23, 24 }
  0x37   : > { %p43_p6 = scmp.eq.s32.totalorder %s42_s10, 0  ;;  %p142_p7 = scmp.ne.s32.totalorder %s2075_s16, %s2071_s2 }
  0x38   : > { %p2294_p8 = por %p137_p5, %p136_p4  ;;  %p143_p9 = scmp.eq.s32.totalorder %s1399_s24, 24 }
  0x39   : > { %s2299_s12 = scalar_select %p43_p6, %s2103_s21, %s45_s28  }
  0x3a   : > { %s2744_s11 = scalar_select %p2294_p8, 1, 0 }
  0x3b   : > { %2745 = sst [smem:[#allocation28_spill]] %s2299_s12  ;;  %s123_s13 = ssub.s32 %s121_s1, %s122_s8 }
  0x3c   : > { %p2301_p10 = por %p143_p9, %p142_p7  ;;  %p124_p11 = scmp.eq.s32.totalorder %s123_s13, 0 }
  0x3d   : > { %p2723_p12 = scmp.lt.s32.totalorder %s2107_s22, 25  ;;  %s166_s15 = sand.u32 1, %s2103_s21  }
  0x3e   : > { %s2746_s14 = scalar_select %p2301_p10, 1, 0 }
  0x3f   : > { %s2308_s20 = scalar_select %p124_p11, %s2079_s17, %s126_s9  }
  0x40   : > { %2747 = sst [smem:[#allocation29_spill]] %s2746_s14  ;;  %s1402_s26 = sshll.u32 %s166_s15, 5 }
  0x41   : > { %2748 = sst [smem:[#allocation30_spill]] %s2308_s20  ;;  %p2314_p0 = pnand %p2723_p12, %p2276_p2 }
  0x42   : > { %s1564_s24 = scalar_select %p2276_p2, [#allocation4], [#allocation13] }
  0x43   : > { %s1565_s28 = scalar_select %p2276_p2, %s2107_s22, 0 }
  0x44   : > { %s2784_s24 = smov (!%p2723_p12, %s1564_s24), [#allocation17]  ;;  %s170_s1 = scalar_lea.vmem [#allocation7], %s1402_s26 }
  0x45   : > { %s2786_s28 = smov (!%p2723_p12, %s1565_s28), 0  ;;  %s178_s8 = sshll.u32 %s170_s1, 4  ;;  %s2327_s8 = int_to_ptr.vmem [resolvable:$true] %s178_s8 }
  0x46   : > { %s171_s9 = sld [smem:[%s2784_s24 + %s2786_s28]]  ;;  %p1410_p4 = scmp.ge.s32.totalorder %s2107_s22, 1 }
  0x47   : > { %p212_p5 = scmp.lt.s32.totalorder %s2107_s22, 26  ;;  %s2751_s4 = sld [smem:[#allocation32_spill]] }
  0x48   : > { %s2340_s26 = scalar_lea.sflag [#allocation8], %s166_s15  ;;  %p1929_p7 = pneg %p2314_p0 }
  0x49   : > { %p2331_p6 = pnand %p1410_p4, %p212_p5 }
  0x4c   : > { %s1553_s13 = sshll.u32 %s171_s9, 8 }
  0x4d   : > { %s2338_s21 = scalar_lea.hbm %s2751_s4, %s1553_s13  ;;  %s1932_s12 = scalar_lea.hbm %s2751_s4, 2560 }
  0x4e   : > { %s1927_s24 = scalar_lea.hbm %s2338_s21, 512  ;;  %p1933_p4 = scmp.lt.u32.totalorder %s2338_s21, %s2751_s4 }
  0x4f   : > { %p1928_p2 = scmp.ne.s32.totalorder %s2338_s21, %s1927_s24  ;;  %p1934_p5 = scmp.lt.u32.totalorder %s1932_s12, %s1927_s24 }
  0x50   : > { %p1936_p13 = scmp.lt.u32.totalorder %s1927_s24, %s2338_s21 }
  0x51   : > { %p1930_p9 = pnand %p1929_p7, %p1928_p2  ;;  %p1935_p12 = por %p1934_p5, %p1933_p4 }
  0x53   : > { %p1931_p11 = pneg %p1930_p9  ;;  %p1937_p1 = por %p1936_p13, %p1935_p12 }
  0x55   : > { %p1938_p10 = pnand %p1937_p1, %p1931_p11 }
  0x57   : > { %1941 = shalt.err (!%p1938_p10)
}
  0x58   : > { %s1942_s15 = scalar_lea.vmem %s2327_s8, 512  ;;  %s2113_s29 = smov [#allocation7]  }
  0x59   : > { %p1943_p2 = scmp.ne.s32.totalorder %s2327_s8, %s1942_s15  ;;  %s1947_s28 = sshll.u32 %s2113_s29, 4  ;;  %s1948_s28 = int_to_ptr.vmem [resolvable:$false] %s1947_s28 }
  0x5a   : > { %s1949_s1 = scalar_lea.vmem %s1948_s28, 1024  ;;  %p1950_p3 = scmp.lt.s32.totalorder %s2327_s8, %s1948_s28 }
  0x5b   : > { %p1945_p9 = pnand %p1943_p2, %p1929_p7  ;;  %p1951_p4 = scmp.lt.s32.totalorder %s1949_s1, %s1942_s15 }
  0x5d   : > { %p1946_p8 = pneg %p1945_p9  ;;  %p1952_p5 = por %p1951_p4, %p1950_p3 }
  0x5f   : > { %p1953_p13 = pnand %p1952_p5, %p1946_p8 }
  0x61   : > { %1956 = shalt.err (!%p1953_p13)
}
  0x62   : > { %s2728_s24 = smov 1280   ;;  %s2729_s12 = smov 256  }
  0x63   : > { %s2730_s9 = smov 16   ;;  %s68_s13 = sld [smem:[#allocation4 + %s2107_s22]] }
  0x64   : > { %1583 = dma.hbm_to_vmem [thread:$0]  (!%p2314_p0), %s2338_s21, 512, %s2327_s8, %s2340_s26, %s2728_s24, %s2729_s12, %s2730_s9  }
  0x65   : > { %s69_s15 = sld [smem:[#allocation3 + %s2107_s22]]  ;;  %p84_p1 = scmp.ne.s32.totalorder %s2091_s3, %s2087_s19 }
  0x66   : > { %s70_s29 = sld [smem:[#allocation4 + %s2264_s25]]  ;;  %p90_p3 = scmp.ne.s32.totalorder %s2087_s19, %s2083_s18 }
  0x67   : > { %s71_s28 = sld [smem:[#allocation3 + %s2264_s25]]  ;;  %p2752_p8 = scmp.eq.s32.totalorder %s2260_s23, 0 }
  0x68   : > { %s188_s27 = sand.u32 1, %s2091_s3   ;;  %s77_s4 = sadd.s32 1, %s2091_s3 }
  0x69   : > { %p2381_p10 = por %p90_p3, %p2752_p8  ;;  %p2754_p12 = scmp.eq.s32.totalorder %s2107_s22, 0 }
  0x6a   : > { %s1405_s24 = sshll.u32 %s188_s27, 10  ;;  %p2756_p11 = scmp.lt.s32.totalorder %s2107_s22, 25 }
  0x6b   : > { %s2753_s1 = scalar_select %p2381_p10, 1, 0 }
  0x6c   : > { %p2389_p0 = por %p84_p1, %p2754_p12  ;;  %s72_s8 = ssub.s32 %s68_s13, %s70_s29 }
  0x6d   : > { %s73_s26 = ssub.s32 %s69_s15, %s71_s28  ;;  %p2759_p9 = pmov %p2756_p11 }
  0x6e   : > { %s74_s18 = sor.u32 %s73_s26, %s72_s8  ;;  %p2397_p2 = pnand %p2756_p11, %p2389_p0 }
  0x6f   : > { %p75_p7 = scmp.eq.s32.totalorder %s74_s18, 0  ;;  %p2760_p4 = pmov %p2759_p9 }
  0x70   : > { %s1567_s9 = scalar_select %p2389_p0, [#allocation4], [#allocation14] }
  0x71   : > { %s2404_s20 = scalar_select %p75_p7, %s2091_s3, %s77_s4  }
  0x72   : > { %s1568_s17 = scalar_select %p2389_p0, %s2107_s22, 0 }
  0x73   : > { %2758 = sst [smem:[#allocation31_spill]] %s2404_s20  ;;  %s2788_s9 = smov (!%p2759_p9, %s1567_s9), [#allocation18] }
  0x74   : > { %s2790_s17 = smov (!%p2760_p4, %s1568_s17), 0  ;;  %p2761_p5 = pmov %p2760_p4 }
  0x75   : > { %s1569_s13 = scalar_select %p2389_p0, [#allocation3], [#allocation15] }
  0x76   : > { %s193_s15 = sld [smem:[%s2788_s9 + %s2790_s17]]  ;;  %s192_s8 = scalar_lea.vmem [#allocation10], %s1405_s24 }
  0x77   : > { %s2792_s13 = smov (!%p2761_p5, %s1569_s13), [#allocation19]  ;;  %s204_s26 = sshll.u32 %s192_s8, 4  ;;  %s2417_s26 = int_to_ptr.vmem [resolvable:$true] %s204_s26 }
  0x78   : > { %s194_s29 = sld [smem:[%s2792_s13 + %s2790_s17]]  ;;  %s2424_s9 = scalar_lea.sflag [#allocation11], %s188_s27 }
  0x79   : > { %p1959_p1 = pneg %p2397_p2  ;;  %s1962_s3 = scalar_lea.hbm %s2716_s5, 409600 }
  0x7c   : > { %s1563_s28 = smul.u32 1280, %s193_s15 }
  0x7e   : > { %s1407_s18 = sshll.u32 %s194_s29, 2 }
  0x7f   : > { %s201_s4 = sadd.s32 %s1563_s28, %s1407_s18 }
  0x80   : > { %s1409_s20 = sshll.u32 %s201_s4, 6 }
  0x81   : > { %s2422_s14 = scalar_lea.hbm %s2716_s5, %s1409_s20 }
  0x82   : > { %s1957_s17 = scalar_lea.hbm %s2422_s14, 16384  ;;  %p1963_p12 = scmp.lt.u32.totalorder %s2422_s14, %s2716_s5 }
  0x83   : > { %p1958_p13 = scmp.ne.s32.totalorder %s2422_s14, %s1957_s17  ;;  %p1964_p0 = scmp.lt.u32.totalorder %s1962_s3, %s1957_s17 }
  0x84   : > { %p1966_p11 = scmp.lt.u32.totalorder %s1957_s17, %s2422_s14 }
  0x85   : > { %p1960_p3 = pnand %p1959_p1, %p1958_p13  ;;  %p1965_p7 = por %p1964_p0, %p1963_p12 }
  0x87   : > { %p1961_p8 = pneg %p1960_p3  ;;  %p1967_p9 = por %p1966_p11, %p1965_p7 }
  0x89   : > { %p1968_p4 = pnand %p1967_p9, %p1961_p8 }
  0x8b   : > { %1971 = shalt.err (!%p1968_p4)
}
  0x8c   : > { %s1972_s27 = scalar_lea.vmem %s2417_s26, 16384  ;;  %s2117_s13 = smov [#allocation10]  }
  0x8d   : > { %p1973_p5 = scmp.ne.s32.totalorder %s2417_s26, %s1972_s27  ;;  %s1977_s15 = sshll.u32 %s2117_s13, 4  ;;  %s1978_s15 = int_to_ptr.vmem [resolvable:$false] %s1977_s15 }
  0x8e   : > { %s1979_s29 = scalar_lea.vmem %s1978_s15, 32768  ;;  %p1980_p10 = scmp.lt.s32.totalorder %s2417_s26, %s1978_s15 }
  0x8f   : > { %p1975_p13 = pnand %p1973_p5, %p1959_p1  ;;  %p1981_p12 = scmp.lt.s32.totalorder %s1979_s29, %s1972_s27 }
  0x91   : > { %p1976_p3 = pneg %p1975_p13  ;;  %p1982_p0 = por %p1981_p12, %p1980_p10 }
  0x93   : > { %p1983_p7 = pnand %p1982_p0, %p1976_p3 }
  0x95   : > { %1986 = shalt.err (!%p1983_p7)
}
  0x96   : > { %s2762_s28 = smov 16   ;;  %s2763_s8 = smov 256  }
  0x97   : > { %s2764_s18 = smov 1280   ;;  %216 = sbr.rel (%p2331_p6) target bundleno = 688 (0x2b0), region = 32 }
  0x98   : > { %1590 = dma.hbm_to_vmem [thread:$0]  (!%p2397_p2), %s2422_s14, 16384, %s2417_s26, %s2424_s9, %s2764_s18, %s2763_s8, %s2762_s28  }
  0x99   : > { %s218_s4 = sand.u32 (!%p2331_p6), 1, %s2099_s0   ;;  %p2765_p10 = scmp.ne.s32.totalorder (!%p2331_p6), %s2743_s30, 0 }
  0x9a   : > { %s1411_s17 = sshll.u32 (!%p2331_p6), %s218_s4, 5  ;;  %s219_s24 = scalar_lea.sflag (!%p2331_p6), [#allocation8], %s218_s4 }
  0x9b   : > { %s2458_s21 = scalar_lea.vmem (!%p2331_p6), [#allocation7], %s1411_s17 }
  0x9e   : > { %2058 = dma.done.wait (%p2765_p10), %s219_s24, 512  }
  0x9f   : > { %2060 = vsyncadd (%p2765_p10), %s219_s24, 4294966784  ;;  %s227_s12 = sand.u32 1, %s2087_s19   ;;  %p2766_p6 = scmp.ne.s32.totalorder %s2753_s1, 0 }
  0xa0   : > { %s1412_s3 = sshll.u32 %s227_s12, 10  ;;  %s228_s14 = scalar_lea.sflag [#allocation11], %s227_s12 }
  0xa1   : > { %s2465_s26 = scalar_lea.vmem [#allocation10], %s1412_s3 }
  0xa2   : > { %2062 = dma.done.wait (%p2766_p6), %s228_s14, 16384  }
  0xa3   : > { %2064 = vsyncadd (%p2766_p6), %s228_s14, 4294950912  ;;  %s256_s10 = sand.u32 1, %s2075_s16   ;;  %s267_s9 = sld [smem:[#allocation5 + %s2260_s23]] }
  0xa4   : > { %s1413_s30 = sshll.u32 %s256_s10, 6 }
  0xa5   : > { %s2475_s25 = scalar_lea.vmem [#allocation12], %s1413_s30 }
  0xa9   : > { %p1414_p2 = scmp.ne.s32.totalorder %s267_s9, 1 }
  0xaa   : > { %v272_v0 = vld [vmem:[%s2717_s6] sm:$0xff] (!%p1414_p2)  ;;  %v2118_v1 = vmov (!%p1414_p2), 0   ;;  %v273_v2 = vld [vmem:[%s2717_s6 + $0x8] sm:$0xff] (!%p1414_p2) }
  0xab   : > { %271 = sbr.rel (%p1414_p2) target bundleno = 306 (0x132), region = 44  ;;  %1688 = vset.pattern.permute.xlu0 (!%p1414_p2), %v2118_v1 }
  0xac   : > { %276 = vperm.xlu0 (!%p1414_p2), %1688, %v272_v0  }
  0xb0   : > { %281 = vperm.xlu0 (!%p1414_p2), %1688, %v273_v2  }
 0x12b   : > { %v277_v3 = vpop.permute.xlu0 %276 }
 0x12c   : > { %284 = vst [vmem:[%s2475_s25] sm:$0xff] %v277_v3  ;;  %285 = vst [vmem:[%s2475_s25 + $0x8] sm:$0xff] %v277_v3 }
 0x12d   : > { %286 = vst [vmem:[%s2475_s25 + $0x10] sm:$0xff] %v277_v3  ;;  %287 = vst [vmem:[%s2475_s25 + $0x18] sm:$0xff] %v277_v3 }
 0x12f   : > { %v282_v4 = vpop.permute.xlu0 %281 }
 0x130   : > { %288 = vst [vmem:[%s2475_s25 + $0x20] sm:$0xff] %v282_v4  ;;  %289 = vst [vmem:[%s2475_s25 + $0x28] sm:$0xff] %v282_v4 }
 0x131   : > { %290 = vst [vmem:[%s2475_s25 + $0x30] sm:$0xff] %v282_v4  ;;  %291 = vst [vmem:[%s2475_s25 + $0x38] sm:$0xff] %v282_v4 }
 0x132 PF: > { %s292_s15 = sld [smem:[#allocation6 + %s2260_s23]] }
 0x138   : > { %p1415_p1 = scmp.ne.s32.totalorder %s292_s15, 1 }
 0x139   : > { %v1689_v5 = vld [vmem:[%s2465_s26 + $0x4] ss:$16 sps:$4 sm:$0xff] (!%p1415_p1)   ;;  %v1691_v6 = vld [vmem:[%s2465_s26 + $0xc] ss:$16 sps:$4 sm:$0xff] (!%p1415_p1)   ;;  %v1693_v7 = vld [vmem:[%s2465_s26] ss:$16 sps:$4 sm:$0xff] (!%p1415_p1)  }
 0x13a   : > { %296 = sbr.rel (%p1415_p1) target bundleno = 660 (0x294), region = 48  ;;  %1097 = vmatprep.subr.bf16.mxu0 (!%p1415_p1), %v1689_v5  ;;  %v1694_v8 = vld [vmem:[%s2465_s26 + $0x8] ss:$16 sps:$4 sm:$0xff] (!%p1415_p1)   ;;  %1183 = vmatprep.subr.bf16.mxu1 (!%p1415_p1), %v1691_v6  ;;  %v1695_v9 = vld [vmem:[%s2465_s26 + $0x24] ss:$16 sps:$4 sm:$0xff] (!%p1415_p1)  }
 0x13b   : > { %1098 = vmatpush1.bf16.msra.mxu0 (!%p1415_p1), %v1693_v7  ;;  %1184 = vmatpush1.bf16.msra.mxu1 (!%p1415_p1), %v1694_v8  ;;  %v1697_v10 = vld [vmem:[%s2465_s26 + $0x2c] ss:$16 sps:$4 sm:$0xff] (!%p1415_p1)   ;;  %v1699_v11 = vld [vmem:[%s2465_s26 + $0x20] ss:$16 sps:$4 sm:$0xff] (!%p1415_p1)   ;;  %v1700_v12 = vld [vmem:[%s2465_s26 + $0x28] ss:$16 sps:$4 sm:$0xff] (!%p1415_p1)  }
 0x13c   : > { %1099 = vmatprep.subr.bf16.mxu0 (!%p1415_p1), %v1695_v9  ;;  %1185 = vmatprep.subr.bf16.mxu1 (!%p1415_p1), %v1697_v10  ;;  %v1701_v13 = vld [vmem:[%s2465_s26 + $0x44] ss:$16 sps:$4 sm:$0xff] (!%p1415_p1)   ;;  %v1703_v14 = vld [vmem:[%s2465_s26 + $0x4c] ss:$16 sps:$4 sm:$0xff] (!%p1415_p1)   ;;  %v1705_v15 = vld [vmem:[%s2465_s26 + $0x40] ss:$16 sps:$4 sm:$0xff] (!%p1415_p1)  }
 0x13d   : > { %v1706_v16 = vld [vmem:[%s2465_s26 + $0x48] ss:$16 sps:$4 sm:$0xff] (!%p1415_p1)   ;;  %v1707_v17 = vld [vmem:[%s2465_s26 + $0x64] ss:$16 sps:$4 sm:$0xff] (!%p1415_p1)   ;;  %v1709_v18 = vld [vmem:[%s2465_s26 + $0x6c] ss:$16 sps:$4 sm:$0xff] (!%p1415_p1)  }
 0x13e   : > { %v1711_v19 = vld [vmem:[%s2465_s26 + $0x60] ss:$16 sps:$4 sm:$0xff] (!%p1415_p1)   ;;  %v1712_v20 = vld [vmem:[%s2465_s26 + $0x68] ss:$16 sps:$4 sm:$0xff] (!%p1415_p1)   ;;  %v1713_v21 = vld [vmem:[%s2465_s26 + $0x84] ss:$16 sps:$4 sm:$0xff] (!%p1415_p1)  }
 0x13f   : > { %1100 = vmatpush1.bf16.msra.mxu0 (!%p1415_p1), %v1699_v11  ;;  %1186 = vmatpush1.bf16.msra.mxu1 (!%p1415_p1), %v1700_v12  ;;  %v1715_v22 = vld [vmem:[%s2465_s26 + $0x8c] ss:$16 sps:$4 sm:$0xff] (!%p1415_p1)   ;;  %v1717_v23 = vld [vmem:[%s2465_s26 + $0x80] ss:$16 sps:$4 sm:$0xff] (!%p1415_p1)   ;;  %v1718_v24 = vld [vmem:[%s2465_s26 + $0x88] ss:$16 sps:$4 sm:$0xff] (!%p1415_p1)  }
 0x140   : > { %1101 = vmatprep.subr.bf16.mxu0 (!%p1415_p1), %v1701_v13  ;;  %1187 = vmatprep.subr.bf16.mxu1 (!%p1415_p1), %v1703_v14  ;;  %v1719_v25 = vld [vmem:[%s2465_s26 + $0xa4] ss:$16 sps:$4 sm:$0xff] (!%p1415_p1)   ;;  %v1721_v26 = vld [vmem:[%s2465_s26 + $0xac] ss:$16 sps:$4 sm:$0xff] (!%p1415_p1)   ;;  %v1723_v27 = vld [vmem:[%s2465_s26 + $0xa0] ss:$16 sps:$4 sm:$0xff] (!%p1415_p1)  }
 0x141   : > { %v1724_v28 = vld [vmem:[%s2465_s26 + $0xa8] ss:$16 sps:$4 sm:$0xff]   ;;  %v1725_v29 = vld [vmem:[%s2465_s26 + $0xc4] ss:$16 sps:$4 sm:$0xff]   ;;  %v1727_v30 = vld [vmem:[%s2465_s26 + $0xcc] ss:$16 sps:$4 sm:$0xff]  }
 0x142   : > { %v1729_v31 = vld [vmem:[%s2465_s26 + $0xc0] ss:$16 sps:$4 sm:$0xff]   ;;  %v1730_v32 = vld [vmem:[%s2465_s26 + $0xc8] ss:$16 sps:$4 sm:$0xff]   ;;  %v1731_v33 = vld [vmem:[%s2465_s26 + $0xe4] ss:$16 sps:$4 sm:$0xff]  }
 0x143   : > { %1102 = vmatpush1.bf16.msra.mxu0 %v1705_v15  ;;  %1188 = vmatpush1.bf16.msra.mxu1 %v1706_v16  ;;  %v1733_v34 = vld [vmem:[%s2465_s26 + $0xec] ss:$16 sps:$4 sm:$0xff]   ;;  %v1735_v35 = vld [vmem:[%s2465_s26 + $0xe0] ss:$16 sps:$4 sm:$0xff]   ;;  %v1736_v36 = vld [vmem:[%s2465_s26 + $0xe8] ss:$16 sps:$4 sm:$0xff]  }
 0x144   : > { %1103 = vmatprep.subr.bf16.mxu0 %v1707_v17  ;;  %1189 = vmatprep.subr.bf16.mxu1 %v1709_v18  ;;  %v1737_v37 = vld [vmem:[%s2465_s26 + $0x104] ss:$16 sps:$4 sm:$0xff]   ;;  %v1739_v38 = vld [vmem:[%s2465_s26 + $0x10c] ss:$16 sps:$4 sm:$0xff]   ;;  %v1741_v39 = vld [vmem:[%s2465_s26 + $0x100] ss:$16 sps:$4 sm:$0xff]  }
 0x145   : > { %v1742_v40 = vld [vmem:[%s2465_s26 + $0x108] ss:$16 sps:$4 sm:$0xff]   ;;  %v1743_v41 = vld [vmem:[%s2465_s26 + $0x124] ss:$16 sps:$4 sm:$0xff]   ;;  %v1745_v42 = vld [vmem:[%s2465_s26 + $0x12c] ss:$16 sps:$4 sm:$0xff]  }
 0x146   : > { %v1747_v43 = vld [vmem:[%s2465_s26 + $0x120] ss:$16 sps:$4 sm:$0xff]   ;;  %v1748_v44 = vld [vmem:[%s2465_s26 + $0x128] ss:$16 sps:$4 sm:$0xff]   ;;  %v1749_v45 = vld [vmem:[%s2465_s26 + $0x144] ss:$16 sps:$4 sm:$0xff]  }
 0x147   : > { %1104 = vmatpush1.bf16.msra.mxu0 %v1711_v19  ;;  %1190 = vmatpush1.bf16.msra.mxu1 %v1712_v20  ;;  %v1751_v46 = vld [vmem:[%s2465_s26 + $0x14c] ss:$16 sps:$4 sm:$0xff]   ;;  %v1753_v47 = vld [vmem:[%s2465_s26 + $0x140] ss:$16 sps:$4 sm:$0xff]   ;;  %v1754_v48 = vld [vmem:[%s2465_s26 + $0x148] ss:$16 sps:$4 sm:$0xff]  }
 0x148   : > { %1105 = vmatprep.subr.bf16.mxu0 %v1713_v21  ;;  %1191 = vmatprep.subr.bf16.mxu1 %v1715_v22  ;;  %v1755_v49 = vld [vmem:[%s2465_s26 + $0x164] ss:$16 sps:$4 sm:$0xff]   ;;  %v1757_v50 = vld [vmem:[%s2465_s26 + $0x16c] ss:$16 sps:$4 sm:$0xff]   ;;  %v1759_v51 = vld [vmem:[%s2465_s26 + $0x160] ss:$16 sps:$4 sm:$0xff]  }
 0x149   : > { %v1760_v52 = vld [vmem:[%s2465_s26 + $0x168] ss:$16 sps:$4 sm:$0xff]   ;;  %v1787_v53 = vld [vmem:[%s2458_s21 + $0x4] ss:$16 sps:$4 sm:$0xff]   ;;  %v1763_v55 = vld [vmem:[%s2465_s26 + $0x18c] ss:$16 sps:$4 sm:$0xff]  }
 0x14a   : > { %v1761_v54 = vld [vmem:[%s2465_s26 + $0x184] ss:$16 sps:$4 sm:$0xff]   ;;  %1129 = vmatprep.mubr.bf16.mxu0 %v1787_v53  ;;  %1215 = vmatprep.mubr.bf16.mxu1 %v1787_v53  ;;  %v1765_v56 = vld [vmem:[%s2465_s26 + $0x180] ss:$16 sps:$4 sm:$0xff]   ;;  %v1766_v57 = vld [vmem:[%s2465_s26 + $0x188] ss:$16 sps:$4 sm:$0xff]  }
 0x14b   : > { %1106 = vmatpush1.bf16.msra.mxu0 %v1717_v23  ;;  %1192 = vmatpush1.bf16.msra.mxu1 %v1718_v24  ;;  %v1767_v58 = vld [vmem:[%s2465_s26 + $0x1a4] ss:$16 sps:$4 sm:$0xff]   ;;  %v1769_v59 = vld [vmem:[%s2465_s26 + $0x1ac] ss:$16 sps:$4 sm:$0xff]   ;;  %v1771_v60 = vld [vmem:[%s2465_s26 + $0x1a0] ss:$16 sps:$4 sm:$0xff]  }
 0x14c   : > { %1107 = vmatprep.subr.bf16.mxu0 %v1719_v25  ;;  %1193 = vmatprep.subr.bf16.mxu1 %v1721_v26  ;;  %v1772_v61 = vld [vmem:[%s2465_s26 + $0x1a8] ss:$16 sps:$4 sm:$0xff]   ;;  %v1773_v62 = vld [vmem:[%s2465_s26 + $0x1c4] ss:$16 sps:$4 sm:$0xff]   ;;  %v1775_v63 = vld [vmem:[%s2465_s26 + $0x1cc] ss:$16 sps:$4 sm:$0xff]  }
 0x14d   : > { %v1777_v0 = vld [vmem:[%s2465_s26 + $0x1c0] ss:$16 sps:$4 sm:$0xff]   ;;  %v1778_v1 = vld [vmem:[%s2465_s26 + $0x1c8] ss:$16 sps:$4 sm:$0xff]   ;;  %v1779_v2 = vld [vmem:[%s2465_s26 + $0x1e4] ss:$16 sps:$4 sm:$0xff]  }
 0x14e   : > { %v1781_v3 = vld [vmem:[%s2465_s26 + $0x1ec] ss:$16 sps:$4 sm:$0xff]   ;;  %v1783_v4 = vld [vmem:[%s2465_s26 + $0x1e0] ss:$16 sps:$4 sm:$0xff]   ;;  %v1784_v5 = vld [vmem:[%s2465_s26 + $0x1e8] ss:$16 sps:$4 sm:$0xff]  }
 0x14f   : > { %1108 = vmatpush1.bf16.msra.mxu0 %v1723_v27  ;;  %1194 = vmatpush1.bf16.msra.mxu1 %v1724_v28  ;;  %v1790_v6 = vld [vmem:[%s2465_s26 + $0x204] ss:$16 sps:$4 sm:$0xff]   ;;  %v1793_v7 = vld [vmem:[%s2465_s26 + $0x20c] ss:$16 sps:$4 sm:$0xff]   ;;  %v1785_v8 = vld [vmem:[%s2458_s21] ss:$16 sps:$4 sm:$0xff]  }
 0x150   : > { %1109 = vmatprep.subr.bf16.mxu0 %v1725_v29  ;;  %1195 = vmatprep.subr.bf16.mxu1 %v1727_v30  ;;  %v1788_v9 = vld [vmem:[%s2465_s26 + $0x200] ss:$16 sps:$4 sm:$0xff]   ;;  %v1791_v10 = vld [vmem:[%s2465_s26 + $0x208] ss:$16 sps:$4 sm:$0xff]   ;;  %v1796_v11 = vld [vmem:[%s2465_s26 + $0x224] ss:$16 sps:$4 sm:$0xff]  }
 0x151   : > { %v1799_v12 = vld [vmem:[%s2465_s26 + $0x22c] ss:$16 sps:$4 sm:$0xff]   ;;  %v1794_v13 = vld [vmem:[%s2465_s26 + $0x220] ss:$16 sps:$4 sm:$0xff]   ;;  %v1797_v14 = vld [vmem:[%s2465_s26 + $0x228] ss:$16 sps:$4 sm:$0xff]  }
 0x152   : > { %v1802_v15 = vld [vmem:[%s2465_s26 + $0x244] ss:$16 sps:$4 sm:$0xff]   ;;  %v1805_v16 = vld [vmem:[%s2465_s26 + $0x24c] ss:$16 sps:$4 sm:$0xff]   ;;  %v1800_v17 = vld [vmem:[%s2465_s26 + $0x240] ss:$16 sps:$4 sm:$0xff]  }
 0x153   : > { %1110 = vmatpush1.bf16.msra.mxu0 %v1729_v31  ;;  %1196 = vmatpush1.bf16.msra.mxu1 %v1730_v32  ;;  %v1803_v18 = vld [vmem:[%s2465_s26 + $0x248] ss:$16 sps:$4 sm:$0xff]   ;;  %v1808_v19 = vld [vmem:[%s2465_s26 + $0x264] ss:$16 sps:$4 sm:$0xff]   ;;  %v1811_v20 = vld [vmem:[%s2465_s26 + $0x26c] ss:$16 sps:$4 sm:$0xff]  }
 0x154   : > { %1111 = vmatprep.subr.bf16.mxu0 %v1731_v33  ;;  %1197 = vmatprep.subr.bf16.mxu1 %v1733_v34  ;;  %v1806_v21 = vld [vmem:[%s2465_s26 + $0x260] ss:$16 sps:$4 sm:$0xff]   ;;  %v1809_v22 = vld [vmem:[%s2465_s26 + $0x268] ss:$16 sps:$4 sm:$0xff]   ;;  %v1814_v23 = vld [vmem:[%s2465_s26 + $0x284] ss:$16 sps:$4 sm:$0xff]  }
 0x155   : > { %v1817_v24 = vld [vmem:[%s2465_s26 + $0x28c] ss:$16 sps:$4 sm:$0xff]   ;;  %v1812_v25 = vld [vmem:[%s2465_s26 + $0x280] ss:$16 sps:$4 sm:$0xff]   ;;  %v1815_v26 = vld [vmem:[%s2465_s26 + $0x288] ss:$16 sps:$4 sm:$0xff]  }
 0x156   : > { %v1820_v27 = vld [vmem:[%s2465_s26 + $0x2a4] ss:$16 sps:$4 sm:$0xff]   ;;  %v1823_v28 = vld [vmem:[%s2465_s26 + $0x2ac] ss:$16 sps:$4 sm:$0xff]   ;;  %v1818_v29 = vld [vmem:[%s2465_s26 + $0x2a0] ss:$16 sps:$4 sm:$0xff]  }
 0x157   : > { %1112 = vmatpush1.bf16.msra.mxu0 %v1735_v35  ;;  %1198 = vmatpush1.bf16.msra.mxu1 %v1736_v36  ;;  %v1821_v30 = vld [vmem:[%s2465_s26 + $0x2a8] ss:$16 sps:$4 sm:$0xff]   ;;  %v1826_v31 = vld [vmem:[%s2465_s26 + $0x2c4] ss:$16 sps:$4 sm:$0xff]   ;;  %v1829_v32 = vld [vmem:[%s2465_s26 + $0x2cc] ss:$16 sps:$4 sm:$0xff]  }
 0x158   : > { %1113 = vmatprep.subr.bf16.mxu0 %v1737_v37  ;;  %1199 = vmatprep.subr.bf16.mxu1 %v1739_v38  ;;  %v1886_v33 = vld [vmem:[%s2458_s21 + $0xc] ss:$16 sps:$4 sm:$0xff]   ;;  %v1824_v34 = vld [vmem:[%s2465_s26 + $0x2c0] ss:$16 sps:$4 sm:$0xff]   ;;  %v1827_v35 = vld [vmem:[%s2465_s26 + $0x2c8] ss:$16 sps:$4 sm:$0xff]  }
 0x159   : > { %v1832_v36 = vld [vmem:[%s2465_s26 + $0x2e4] ss:$16 sps:$4 sm:$0xff]   ;;  %v1835_v37 = vld [vmem:[%s2465_s26 + $0x2ec] ss:$16 sps:$4 sm:$0xff]   ;;  %v1830_v38 = vld [vmem:[%s2465_s26 + $0x2e0] ss:$16 sps:$4 sm:$0xff]  }
 0x15a   : > { %v1859_v53 = vld [vmem:[%s2465_s26 + $0x36c] ss:$16 sps:$4 sm:$0xff]  }
 0x15b   : > { %1114 = vmatpush1.bf16.msra.mxu0 %v1741_v39  ;;  %1200 = vmatpush1.bf16.msra.mxu1 %v1742_v40  ;;  %v1833_v39 = vld [vmem:[%s2465_s26 + $0x2e8] ss:$16 sps:$4 sm:$0xff]   ;;  %v1838_v40 = vld [vmem:[%s2465_s26 + $0x304] ss:$16 sps:$4 sm:$0xff]  }
 0x15c   : > { %1115 = vmatprep.subr.bf16.mxu0 %v1743_v41  ;;  %1201 = vmatprep.subr.bf16.mxu1 %v1745_v42  ;;  %v1841_v41 = vld [vmem:[%s2465_s26 + $0x30c] ss:$16 sps:$4 sm:$0xff]   ;;  %v1836_v42 = vld [vmem:[%s2465_s26 + $0x300] ss:$16 sps:$4 sm:$0xff]  }
 0x15f   : > { %1116 = vmatpush1.bf16.msra.mxu0 %v1747_v43  ;;  %1202 = vmatpush1.bf16.msra.mxu1 %v1748_v44  ;;  %v1839_v43 = vld [vmem:[%s2465_s26 + $0x308] ss:$16 sps:$4 sm:$0xff]   ;;  %v1844_v44 = vld [vmem:[%s2465_s26 + $0x324] ss:$16 sps:$4 sm:$0xff]  }
 0x160   : > { %1117 = vmatprep.subr.bf16.mxu0 %v1749_v45  ;;  %1203 = vmatprep.subr.bf16.mxu1 %v1751_v46  ;;  %v1847_v45 = vld [vmem:[%s2465_s26 + $0x32c] ss:$16 sps:$4 sm:$0xff]   ;;  %v1842_v46 = vld [vmem:[%s2465_s26 + $0x320] ss:$16 sps:$4 sm:$0xff]  }
 0x163   : > { %1118 = vmatpush1.bf16.msra.mxu0 %v1753_v47  ;;  %1204 = vmatpush1.bf16.msra.mxu1 %v1754_v48  ;;  %v1845_v47 = vld [vmem:[%s2465_s26 + $0x328] ss:$16 sps:$4 sm:$0xff]   ;;  %v1850_v48 = vld [vmem:[%s2465_s26 + $0x344] ss:$16 sps:$4 sm:$0xff]  }
 0x164   : > { %1119 = vmatprep.subr.bf16.mxu0 %v1755_v49  ;;  %1205 = vmatprep.subr.bf16.mxu1 %v1757_v50  ;;  %v1853_v49 = vld [vmem:[%s2465_s26 + $0x34c] ss:$16 sps:$4 sm:$0xff]   ;;  %v1848_v50 = vld [vmem:[%s2465_s26 + $0x340] ss:$16 sps:$4 sm:$0xff]  }
 0x167   : > { %1120 = vmatpush1.bf16.msra.mxu0 %v1759_v51  ;;  %1206 = vmatpush1.bf16.msra.mxu1 %v1760_v52  ;;  %v1851_v51 = vld [vmem:[%s2465_s26 + $0x348] ss:$16 sps:$4 sm:$0xff]   ;;  %v1856_v52 = vld [vmem:[%s2465_s26 + $0x364] ss:$16 sps:$4 sm:$0xff]  }
 0x168   : > { %1121 = vmatprep.subr.bf16.mxu0 %v1761_v54  ;;  %1207 = vmatprep.subr.bf16.mxu1 %v1763_v55  ;;  %v1854_v54 = vld [vmem:[%s2465_s26 + $0x360] ss:$16 sps:$4 sm:$0xff]   ;;  %v1857_v55 = vld [vmem:[%s2465_s26 + $0x368] ss:$16 sps:$4 sm:$0xff]  }
 0x16b   : > { %1122 = vmatpush1.bf16.msra.mxu0 %v1765_v56  ;;  %1208 = vmatpush1.bf16.msra.mxu1 %v1766_v57  ;;  %v1862_v56 = vld [vmem:[%s2465_s26 + $0x384] ss:$16 sps:$4 sm:$0xff]   ;;  %v1865_v57 = vld [vmem:[%s2465_s26 + $0x38c] ss:$16 sps:$4 sm:$0xff]  }
 0x16c   : > { %1123 = vmatprep.subr.bf16.mxu0 %v1767_v58  ;;  %1209 = vmatprep.subr.bf16.mxu1 %v1769_v59  ;;  %v1860_v58 = vld [vmem:[%s2465_s26 + $0x380] ss:$16 sps:$4 sm:$0xff]   ;;  %v1863_v59 = vld [vmem:[%s2465_s26 + $0x388] ss:$16 sps:$4 sm:$0xff]  }
 0x16f   : > { %1124 = vmatpush1.bf16.msra.mxu0 %v1771_v60  ;;  %1210 = vmatpush1.bf16.msra.mxu1 %v1772_v61  ;;  %v1868_v60 = vld [vmem:[%s2465_s26 + $0x3a4] ss:$16 sps:$4 sm:$0xff]   ;;  %v1871_v61 = vld [vmem:[%s2465_s26 + $0x3ac] ss:$16 sps:$4 sm:$0xff]  }
 0x170   : > { %1125 = vmatprep.subr.bf16.mxu0 %v1773_v62  ;;  %1211 = vmatprep.subr.bf16.mxu1 %v1775_v63  ;;  %v1866_v62 = vld [vmem:[%s2465_s26 + $0x3a0] ss:$16 sps:$4 sm:$0xff]   ;;  %v1869_v63 = vld [vmem:[%s2465_s26 + $0x3a8] ss:$16 sps:$4 sm:$0xff]  }
 0x173   : > { %1126 = vmatpush1.bf16.msra.mxu0 %v1777_v0  ;;  %1212 = vmatpush1.bf16.msra.mxu1 %v1778_v1  ;;  %v1874_v0 = vld [vmem:[%s2465_s26 + $0x3c4] ss:$16 sps:$4 sm:$0xff]   ;;  %v1877_v1 = vld [vmem:[%s2465_s26 + $0x3cc] ss:$16 sps:$4 sm:$0xff]  }
 0x174   : > { %1127 = vmatprep.subr.bf16.mxu0 %v1779_v2  ;;  %1213 = vmatprep.subr.bf16.mxu1 %v1781_v3  ;;  %v1872_v2 = vld [vmem:[%s2465_s26 + $0x3c0] ss:$16 sps:$4 sm:$0xff]   ;;  %v1875_v3 = vld [vmem:[%s2465_s26 + $0x3c8] ss:$16 sps:$4 sm:$0xff]  }
 0x177   : > { %1128 = vmatpush1.bf16.msra.mxu0 %v1783_v4  ;;  %1214 = vmatpush1.bf16.msra.mxu1 %v1784_v5  ;;  %v1880_v4 = vld [vmem:[%s2465_s26 + $0x3e4] ss:$16 sps:$4 sm:$0xff]   ;;  %v1883_v5 = vld [vmem:[%s2465_s26 + $0x3ec] ss:$16 sps:$4 sm:$0xff]  }
 0x178   : > { %1140 = vmatprep.subr.bf16.mxu0 %v1790_v6  ;;  %1226 = vmatprep.subr.bf16.mxu1 %v1793_v7  ;;  %v1878_v6 = vld [vmem:[%s2465_s26 + $0x3e0] ss:$16 sps:$4 sm:$0xff]   ;;  %v1881_v7 = vld [vmem:[%s2465_s26 + $0x3e8] ss:$16 sps:$4 sm:$0xff]  }
 0x17a   : > { %1130 = vmatmul.mubr.bf16.vlgmr.msra.gmra.mrb[0].mxu0 %v1785_v8  ;;  %1216 = vmatmul.mubr.bf16.vlgmr.msra.gmra.mrb[0].mxu1 %v1785_v8  ;;  %v1884_v8 = vld [vmem:[%s2458_s21 + $0x8] ss:$16 sps:$4 sm:$0xff]  }
 0x17b   : > { %1141 = vmatpush1.bf16.msra.mxu0 %v1788_v9  ;;  %1227 = vmatpush1.bf16.msra.mxu1 %v1791_v10  ;;  %v425_v9 = vld [vmem:[%s2475_s25] sm:$0xff]  ;;  %v427_v10 = vld [vmem:[%s2475_s25 + $0x10] sm:$0xff] }
 0x17c   : > { %1142 = vmatprep.subr.bf16.mxu0 %v1796_v11  ;;  %1228 = vmatprep.subr.bf16.mxu1 %v1799_v12  ;;  %v426_v11 = vld [vmem:[%s2475_s25 + $0x8] sm:$0xff]  ;;  %v428_v12 = vld [vmem:[%s2475_s25 + $0x18] sm:$0xff] }
 0x17d   : > { %1172 = vmatprep.mubr.bf16.mxu0 %v1886_v33  ;;  %1258 = vmatprep.mubr.bf16.mxu1 %v1886_v33 }
 0x17f   : > { %1143 = vmatpush1.bf16.msra.mxu0 %v1794_v13  ;;  %1229 = vmatpush1.bf16.msra.mxu1 %v1797_v14 }
 0x180   : > { %1144 = vmatprep.subr.bf16.mxu0 %v1802_v15  ;;  %1230 = vmatprep.subr.bf16.mxu1 %v1805_v16  ;;  %v429_v15 = vld [vmem:[%s2475_s25 + $0x20] sm:$0xff]  ;;  %v431_v16 = vld [vmem:[%s2475_s25 + $0x30] sm:$0xff] }
 0x183   : > { %1145 = vmatpush1.bf16.msra.mxu0 %v1800_v17  ;;  %1231 = vmatpush1.bf16.msra.mxu1 %v1803_v18 }
 0x184   : > { %1146 = vmatprep.subr.bf16.mxu0 %v1808_v19  ;;  %1232 = vmatprep.subr.bf16.mxu1 %v1811_v20 }
 0x187   : > { %1147 = vmatpush1.bf16.msra.mxu0 %v1806_v21  ;;  %1233 = vmatpush1.bf16.msra.mxu1 %v1809_v22  ;;  %v430_v21 = vld [vmem:[%s2475_s25 + $0x28] sm:$0xff]  ;;  %v432_v22 = vld [vmem:[%s2475_s25 + $0x38] sm:$0xff] }
 0x188   : > { %1148 = vmatprep.subr.bf16.mxu0 %v1814_v23  ;;  %1234 = vmatprep.subr.bf16.mxu1 %v1817_v24 }
 0x18b   : > { %1149 = vmatpush1.bf16.msra.mxu0 %v1812_v25  ;;  %1235 = vmatpush1.bf16.msra.mxu1 %v1815_v26 }
 0x18c   : > { %1150 = vmatprep.subr.bf16.mxu0 %v1820_v27  ;;  %1236 = vmatprep.subr.bf16.mxu1 %v1823_v28 }
 0x18f   : > { %1151 = vmatpush1.bf16.msra.mxu0 %v1818_v29  ;;  %1237 = vmatpush1.bf16.msra.mxu1 %v1821_v30 }
 0x190   : > { %1152 = vmatprep.subr.bf16.mxu0 %v1826_v31  ;;  %1238 = vmatprep.subr.bf16.mxu1 %v1829_v32 }
 0x193   : > { %1153 = vmatpush1.bf16.msra.mxu0 %v1824_v34  ;;  %1239 = vmatpush1.bf16.msra.mxu1 %v1827_v35 }
 0x194   : > { %1154 = vmatprep.subr.bf16.mxu0 %v1832_v36  ;;  %1240 = vmatprep.subr.bf16.mxu1 %v1835_v37 }
 0x197   : > { %1155 = vmatpush1.bf16.msra.mxu0 %v1830_v38  ;;  %1241 = vmatpush1.bf16.msra.mxu1 %v1833_v39 }
 0x198   : > { %1156 = vmatprep.subr.bf16.mxu0 %v1838_v40  ;;  %1242 = vmatprep.subr.bf16.mxu1 %v1841_v41 }
 0x19b   : > { %1157 = vmatpush1.bf16.msra.mxu0 %v1836_v42  ;;  %1243 = vmatpush1.bf16.msra.mxu1 %v1839_v43 }
 0x19c   : > { %1158 = vmatprep.subr.bf16.mxu0 %v1844_v44  ;;  %1244 = vmatprep.subr.bf16.mxu1 %v1847_v45 }
 0x19f   : > { %1159 = vmatpush1.bf16.msra.mxu0 %v1842_v46  ;;  %1245 = vmatpush1.bf16.msra.mxu1 %v1845_v47 }
 0x1a0   : > { %1160 = vmatprep.subr.bf16.mxu0 %v1850_v48  ;;  %1246 = vmatprep.subr.bf16.mxu1 %v1853_v49 }
 0x1a3   : > { %1161 = vmatpush1.bf16.msra.mxu0 %v1848_v50  ;;  %1247 = vmatpush1.bf16.msra.mxu1 %v1851_v51 }
 0x1a4   : > { %1162 = vmatprep.subr.bf16.mxu0 %v1856_v52  ;;  %1248 = vmatprep.subr.bf16.mxu1 %v1859_v53 }
 0x1a7   : > { %1163 = vmatpush1.bf16.msra.mxu0 %v1854_v54  ;;  %1249 = vmatpush1.bf16.msra.mxu1 %v1857_v55 }
 0x1a8   : > { %1164 = vmatprep.subr.bf16.mxu0 %v1862_v56  ;;  %1250 = vmatprep.subr.bf16.mxu1 %v1865_v57 }
 0x1ab   : > { %1165 = vmatpush1.bf16.msra.mxu0 %v1860_v58  ;;  %1251 = vmatpush1.bf16.msra.mxu1 %v1863_v59 }
 0x1ac   : > { %1166 = vmatprep.subr.bf16.mxu0 %v1868_v60  ;;  %1252 = vmatprep.subr.bf16.mxu1 %v1871_v61 }
 0x1af   : > { %1167 = vmatpush1.bf16.msra.mxu0 %v1866_v62  ;;  %1253 = vmatpush1.bf16.msra.mxu1 %v1869_v63 }
 0x1b0   : > { %1168 = vmatprep.subr.bf16.mxu0 %v1874_v0  ;;  %1254 = vmatprep.subr.bf16.mxu1 %v1877_v1 }
 0x1b3   : > { %1169 = vmatpush1.bf16.msra.mxu0 %v1872_v2  ;;  %1255 = vmatpush1.bf16.msra.mxu1 %v1875_v3 }
 0x1b4   : > { %1170 = vmatprep.subr.bf16.mxu0 %v1880_v4  ;;  %1256 = vmatprep.subr.bf16.mxu1 %v1883_v5 }
 0x1b7   : > { %1171 = vmatpush1.bf16.msra.mxu0 %v1878_v6  ;;  %1257 = vmatpush1.bf16.msra.mxu1 %v1881_v7 }
 0x1ba   : > { %1173 = vmatmul.mubr.bf16.vlgmr.msra.gmra.mrb[0].mxu0 %v1884_v8  ;;  %1259 = vmatmul.mubr.bf16.vlgmr.msra.gmra.mrb[0].mxu1 %v1884_v8 }
 0x28d   : > { %v1174_v13 = vpop.f32.mrb[0].mxu0  ;;  %v1260_v14 = vpop.f32.mrb[0].mxu1 }
 0x28e   : > { %v1269_v17 = vadd.f32 %v1174_v13, %v425_v9  ;;  %v1271_v18 = vadd.f32 %v1260_v14, %v427_v10  ;;  %v1176_v19 = vpop.f32.mrb[1].mxu0  ;;  %v1262_v20 = vpop.f32.mrb[1].mxu1 }
 0x28f   : > { %v1270_v23 = vadd.f32 %v1176_v19, %v426_v11  ;;  %v1272_v24 = vadd.f32 %v1262_v20, %v428_v12  ;;  %v1178_v25 = vpop.f32.mrb[2].mxu0  ;;  %v1264_v26 = vpop.f32.mrb[2].mxu1 }
 0x290   : > { %1277 = vst [vmem:[%s2475_s25] sm:$0xff] %v1269_v17  ;;  %1279 = vst [vmem:[%s2475_s25 + $0x10] sm:$0xff] %v1271_v18  ;;  %v1273_v27 = vadd.f32 %v1178_v25, %v429_v15  ;;  %v1275_v28 = vadd.f32 %v1264_v26, %v431_v16  ;;  %v1180_v29 = vpop.f32.mrb[3].mxu0  ;;  %v1266_v30 = vpop.f32.mrb[3].mxu1 }
 0x291   : > { %1278 = vst [vmem:[%s2475_s25 + $0x8] sm:$0xff] %v1270_v23  ;;  %1280 = vst [vmem:[%s2475_s25 + $0x18] sm:$0xff] %v1272_v24  ;;  %v1274_v31 = vadd.f32 %v1180_v29, %v430_v21  ;;  %v1276_v32 = vadd.f32 %v1266_v30, %v432_v22 }
 0x292   : > { %1281 = vst [vmem:[%s2475_s25 + $0x20] sm:$0xff] %v1273_v27  ;;  %1283 = vst [vmem:[%s2475_s25 + $0x30] sm:$0xff] %v1275_v28 }
 0x293   : > { %1282 = vst [vmem:[%s2475_s25 + $0x28] sm:$0xff] %v1274_v31  ;;  %1284 = vst [vmem:[%s2475_s25 + $0x38] sm:$0xff] %v1276_v32 }
 0x294 PF: > { %p2767_p8 = scmp.ne.s32.totalorder %s2744_s11, 0  ;;  %s1300_s8 = sshll.u32 %s2475_s25, 4  ;;  %s2646_s8 = int_to_ptr.vmem [resolvable:$true] %s1300_s8 }
 0x295   : > { %s2655_s21 = scalar_lea.sflag [#allocation9], %s256_s10  ;;  %s1987_s12 = scalar_lea.vmem %s2646_s8, 1024 }
 0x296   : > { %s1574_s29 = scalar_select %p2767_p8, [#allocation3], [#allocation16] }
 0x297   : > { %s2794_s23 = smov (!%p2767_p8, %s2260_s23), 0  ;;  %p1988_p11 = scmp.ne.s32.totalorder %s2646_s8, %s1987_s12 }
 0x298   : > { %s1293_s28 = sld [smem:[%s1574_s29 + %s2794_s23]]  ;;  %s2119_s23 = smov [#allocation12]  }
 0x299   : > { %p1989_p9 = pnand %p1988_p11, %p2767_p8  ;;  %s1991_s3 = sshll.u32 %s2119_s23, 4  ;;  %s1992_s3 = int_to_ptr.vmem [resolvable:$false] %s1991_s3 }
 0x29a   : > { %s1993_s14 = scalar_lea.vmem %s1992_s3, 2048  ;;  %p1994_p5 = scmp.lt.s32.totalorder %s2646_s8, %s1992_s3 }
 0x29b   : > { %p1990_p4 = pneg %p1989_p9  ;;  %p1995_p13 = scmp.lt.s32.totalorder %s1993_s14, %s1987_s12 }
 0x29d   : > { %p1996_p3 = por %p1995_p13, %p1994_p5 }
 0x29e   : > { %s1554_s18 = sshll.u32 %s1293_s28, 9 }
 0x29f   : > { %s2651_s24 = scalar_lea.hbm %s2718_s7, %s1554_s18  ;;  %p1997_p12 = pnand %p1996_p3, %p1990_p4 }
 0x2a1   : > { %2000 = shalt.err (!%p1997_p12)
}
 0x2a2   : > { %s2001_s26 = scalar_lea.hbm %s2651_s24, 1024  ;;  %s2005_s30 = scalar_lea.hbm %s2718_s7, 5120 }
 0x2a3   : > { %p2002_p0 = scmp.ne.s32.totalorder %s2651_s24, %s2001_s26  ;;  %p2006_p6 = scmp.lt.u32.totalorder %s2651_s24, %s2718_s7 }
 0x2a4   : > { %p2007_p2 = scmp.lt.u32.totalorder %s2005_s30, %s2001_s26  ;;  %p2009_p11 = scmp.lt.u32.totalorder %s2001_s26, %s2651_s24 }
 0x2a5   : > { %p2003_p7 = pnand %p2002_p0, %p2767_p8 }
 0x2a6   : > { %p2008_p1 = por %p2007_p2, %p2006_p6 }
 0x2a7   : > { %p2004_p10 = pneg %p2003_p7 }
 0x2a8   : > { %p2010_p9 = por %p2009_p11, %p2008_p1 }
 0x2aa   : > { %p2011_p4 = pnand %p2010_p9, %p2004_p10 }
 0x2ac   : > { %2014 = shalt.err (!%p2011_p4)
}
 0x2ad   : > { %s2120_s27 = smov 512   ;;  %s2121_s1 = smov 2560  }
 0x2ae   : > { %s2122_s13 = smov 32  }
 0x2af   : > { %1576 = dma.vmem_to_hbm [thread:$0]  (%p2767_p8), %s2646_s8, 1024, %s2651_s24, %s2655_s21, %s2120_s27, %s2121_s1, %s2122_s13  }
 0x2b0 PF: > { %s2768_s15 = sld [smem:[#allocation29_spill]]  ;;  %p1596_p5 = scmp.ge.s32.totalorder %s2107_s22, 2 }
 0x2b1   : > { %s1315_s29 = sand.u32 1, %s2071_s2  }
 0x2b2   : > { %s1316_s28 = scalar_lea.sflag [#allocation9], %s1315_s29 }
 0x2b6   : > { %p2769_p13 = scmp.ne.s32.totalorder %s2768_s15, 0 }
 0x2b8   : > { %p1592_p3 = pnand %p1596_p5, %p2769_p13 }
 0x2ba   : > { %2066 = dma.done.wait (!%p1592_p3), %s1316_s28, 1024  }
 0x2bb   : > { %2068 = vsyncadd (!%p1592_p3), %s1316_s28, 4294966272  ;;  %s2770_s22 = sld [smem:[#allocation27_spill]]  ;;  %s2771_s18 = sld [smem:[#allocation24_spill]] }
 0x2bc   : > { %s2772_s17 = sld [smem:[#allocation30_spill]]  ;;  %s2773_s4 = sld [smem:[#allocation25_spill]] }
 0x2bd   : > { %s2774_s3 = sld [smem:[#allocation31_spill]]  ;;  %s2775_s11 = sld [smem:[#allocation26_spill]] }
 0x2be   : > { %s2776_s21 = sld [smem:[#allocation28_spill]]  ;;  %s2777_s2 = smov %s2075_s16 }
 0x2bf   : > { %s2781_s20 = smov %s2099_s0 }
 0x2c1   : > { %p33_p8 = scmp.ge.s32.totalorder %s2770_s22, 27   ;;  %s2778_s16 = smov %s2771_s18 }
 0x2c2   : > { %s2779_s18 = smov %s2087_s19  ;;  %s2780_s19 = smov %s2773_s4 }
 0x2c3   : > { %s2782_s0 = smov %s2775_s11  ;;  %35 = sbr.rel (!%p33_p8) target bundleno = 43 (0x2b), region = 98 }
 0x2ca   :  { %1321 = vsyncpa [#allocation8], 1 }
 0x2cb   :  { %1323 = vsyncpa [#allocation8 + $0x1], 1 }
 0x2cc   :  { %1324 = vsyncpa [#allocation11], 1 }
 0x2cd   :  { %1326 = vsyncpa [#allocation11 + $0x1], 1 }
 0x2ce   :  { %1327 = vsyncpa [#allocation9], 1 }
 0x2cf   :  { %1329 = vsyncpa [#allocation9 + $0x1], 1 }

</bundles_post_ra>
